<compile_context>
chip_gen: v5e
topology: v5e:2x2
jax: 0.10.0
libtpu: 0.0.40
codegen_flags: <defaults>
</compile_context>

<pallas_src>
import jax
import jax.numpy as jnp
from jax import lax
from jax.experimental import pallas as pl
from jax.experimental.pallas import tpu as pltpu


def _round_up(a, b):
    return ((a + b - 1) // b) * b


def _make_qlinear_kernel(tn, use_int8_mxu):
    def kernel(x_ref, w_ref, sb_ref, o_ref, xq_ref, xs_ref):
        j = pl.program_id(1)

        # Activation fake-quant: once per row block (j == 0), reused across j.
        @pl.when(j == 0)
        def _():
            x = x_ref[...].astype(jnp.float32)                       # (tm, K)
            absmax = jnp.maximum(
                jnp.max(jnp.abs(x), axis=-1, keepdims=True), 1e-8)   # (tm, 1)
            inv_scale = 127.0 / absmax            # tm divides only, not tm*K
            x_int = jnp.clip(jnp.round(x * inv_scale), -127.0, 127.0)
            xq_ref[...] = x_int.astype(xq_ref.dtype)
            xs_ref[...] = absmax * (1.0 / 127.0)  # per-token dequant scale

        # Resident scale/bias slab: slice this tile's tn columns (lane-aligned).
        jtn = pl.multiple_of(j * tn, 128)
        sb = sb_ref[:, pl.ds(jtn, tn)]                               # (2, tn) f32
        w_scale = sb[0:1, :]
        bias = sb[1:2, :]

        if use_int8_mxu:
            # Native int8 MXU (v4/v5e/v6e): int8 x int8 -> int32 accumulate.
            acc = lax.dot_general(
                xq_ref[...], w_ref[...],
                dimension_numbers=(((1,), (0,)), ((), ())),
                preferred_element_type=jnp.int32).astype(jnp.float32)
        else:
            # v7x: upcast int8 weight in-kernel; integer-valued bf16 is exact,
            # accumulate in f32 on the MXU.
            acc = lax.dot_general(
                xq_ref[...], w_ref[...].astype(jnp.bfloat16),
                dimension_numbers=(((1,), (0,)), ((), ())),
                preferred_element_type=jnp.float32)

        out = acc * xs_ref[...] * w_scale + bias
        o_ref[...] = out.astype(o_ref.dtype)

    return kernel


def _detect_int8_mxu():
    """v4/v5e/v6e MXUs have a native int8 path; v7x is bf16/fp8 only."""
    try:
        kind = jax.devices()[0].device_kind.lower()
    except Exception:
        return False
    if "v7" in kind or "7x" in kind:
        return False
    return any(g in kind for g in ("v4", "v5", "v6"))


def _vmem_capacity_bytes():
    try:
        return int(pltpu.get_tpu_info().vmem_capacity_bytes)
    except Exception:
        return 64 * 1024 * 1024   # conservative (v7x-sized) fallback


def quantized_linear(x, weight, bias=None, *, tm=None, tn=None,
                     use_int8_mxu=None):
    """x: (..., K); weight: (N, K); bias: (N,) or None. Returns (..., N)."""
    orig_shape = x.shape
    K = orig_shape[-1]
    N = weight.shape[0]
    x2d = x.reshape(-1, K)
    M = x2d.shape[0]

    if use_int8_mxu is None:
        use_int8_mxu = _detect_int8_mxu()
    if bias is None:
        bias = jnp.zeros((N,), dtype=jnp.float32)

    # --- weight fake-quant precomputed once (per-output-channel symmetric int8) ---
    wf = weight.astype(jnp.float32)
    w_absmax = jnp.maximum(jnp.max(jnp.abs(wf), axis=-1, keepdims=True), 1e-8)
    w_int = jnp.clip(jnp.round(wf * (127.0 / w_absmax)), -127.0, 127.0)   # (N, K)
    w_int8_t = w_int.astype(jnp.int8).T                        # (K, N) int8, NN form
    w_scale_row = (w_absmax * (1.0 / 127.0)).reshape(1, N)     # (1, N) f32
    bias_row = bias.astype(jnp.float32).reshape(1, N)

    # --- generation-aware VMEM budget ---
    vmem_cap = _vmem_capacity_bytes()
    budget = (vmem_cap * 3) // 4          # ~96 MiB on v5e/v6e, ~48 MiB on v7x
    vmem_limit = (vmem_cap * 7) // 8

    # --- tile selection: lane-dense tn dividing round_up(N,128); large tm ---
    Np = _round_up(N, 128)
    if tn is None:
        tn = 128
        for cand in (512, 256, 128):
            if cand <= Np and Np % cand == 0:
                tn = cand
                break
    if tm is None:
        tm_pref = 512 if budget >= 80 * 1024 * 1024 else 256
        tm = tm_pref if M >= tm_pref else _round_up(M, 8)

    x_bytes = x2d.dtype.itemsize
    out_bytes = x2d.dtype.itemsize
    xq_bytes = 1 if use_int8_mxu else 2

    def _vmem_est(tm_, tn_):
        per_step = (2 * tm_ * K * x_bytes         # x double-buffer
                    + 2 * K * tn_ * 1             # int8 weight double-buffer
                    + 2 * tm_ * tn_ * out_bytes   # output double-buffer
                    + 2 * 2 * Np * 4)             # resident scale+bias slab
        scratch = tm_ * K * xq_bytes + tm_ * 4
        return per_step + scratch

    # Back off tm first; keep MXU-sized tn >= 256 as long as possible.
    while _vmem_est(tm, tn) > budget and tm > 256:
        tm = max(256, _round_up(tm // 2, 8))
    while _vmem_est(tm, tn) > budget and tn > 256:
        tn //= 2
    while _vmem_est(tm, tn) > budget and tm > 8:
        tm = max(8, _round_up(tm // 2, 8))
    while _vmem_est(tm, tn) > budget and tn > 128:
        tn //= 2

    # --- pad to tile multiples (padded rows/cols are zeros; sliced off at end) ---
    Mp = _round_up(M, tm)
    if Mp != M:
        x2d = jnp.pad(x2d, ((0, Mp - M), (0, 0)))
    if Np != N:
        w_int8_t = jnp.pad(w_int8_t, ((0, 0), (0, Np - N)))
        w_scale_row = jnp.pad(w_scale_row, ((0, 0), (0, Np - N)))
        bias_row = jnp.pad(bias_row, ((0, 0), (0, Np - N)))
    scale_bias = jnp.concatenate([w_scale_row, bias_row], axis=0)   # (2, Np) f32

    grid = (Mp // tm, Np // tn)

    out = pl.pallas_call(
        _make_qlinear_kernel(tn, use_int8_mxu),
        out_shape=jax.ShapeDtypeStruct((Mp, Np), x.dtype),
        grid_spec=pltpu.PrefetchScalarGridSpec(
            num_scalar_prefetch=0,
            grid=grid,
            in_specs=[
                pl.BlockSpec((tm, K), lambda i, j: (i, 0)),    # activations
                pl.BlockSpec((K, tn), lambda i, j: (0, j)),    # int8 weight (K, N)
                pl.BlockSpec((2, Np), lambda i, j: (0, 0)),    # resident scale+bias
            ],
            out_specs=pl.BlockSpec((tm, tn), lambda i, j: (i, j)),
            scratch_shapes=[
                pltpu.VMEM((tm, K), jnp.int8 if use_int8_mxu else jnp.bfloat16),
                pltpu.VMEM((tm, 1), jnp.float32),
            ],
        ),
        compiler_params=pltpu.CompilerParams(
            # j must stay the inner sequential axis so the activation-quant
            # scratch written at j == 0 is valid across the whole j sweep of i.
            dimension_semantics=("parallel", "arbitrary"),
            vmem_limit_bytes=int(vmem_limit),
        ),
    )(x2d, w_int8_t, scale_bias)

    out = out[:M, :N]
    return out.reshape(*orig_shape[:-1], N)


def _reference(x, weight, bias):
    wf = weight.astype(jnp.float32)
    w_absmax = jnp.maximum(jnp.max(jnp.abs(wf), axis=-1, keepdims=True), 1e-8)
    w_q = (jnp.clip(jnp.round(wf * (127.0 / w_absmax)), -127.0, 127.0)
           * (w_absmax / 127.0))
    xf = x.astype(jnp.float32)
    x_absmax = jnp.maximum(jnp.max(jnp.abs(xf), axis=-1, keepdims=True), 1e-8)
    x_q = (jnp.clip(jnp.round(xf * (127.0 / x_absmax)), -127.0, 127.0)
           * (x_absmax / 127.0))
    return (x_q @ w_q.T + bias.astype(jnp.float32)).astype(x.dtype)


if __name__ == "__main__":
    key = jax.random.PRNGKey(0)
    kx, kw, kb = jax.random.split(key, 3)

    batch, seq, in_features, out_features = 2, 8, 32, 64
    x = jax.random.normal(kx, (batch, seq, in_features), dtype=jnp.float32)
    # deterministic "nn.Linear" params (kaiming-uniform-ish range, fixed seed)
    bound = 1.0 / (in_features ** 0.5)
    weight = jax.random.uniform(kw, (out_features, in_features),
                                minval=-bound, maxval=bound, dtype=jnp.float32)
    bias = jax.random.uniform(kb, (out_features,),
                              minval=-bound, maxval=bound, dtype=jnp.float32)

    try:
        out = jax.block_until_ready(quantized_linear(x, weight, bias))
    except Exception:
        # Safety net: if the native int8-MXU path fails to lower on this chip
        # generation, fall back to the universally supported bf16-operand path.
        out = jax.block_until_ready(
            quantized_linear(x, weight, bias, use_int8_mxu=False))

    ref = _reference(x, weight, bias)
    assert out.shape == (batch, seq, out_features)
    max_err = float(jnp.max(jnp.abs(out - ref)))
    assert jnp.allclose(out, ref, atol=2e-4, rtol=2e-4), max_err
    print("KERNEL_OK")
</pallas_src>

<mosaic_0001>
module attributes {stable_mosaic.version = 11 : i64} {
  func.func @kernel(%arg0: i32, %arg1: i32, %arg2: memref<16x32xf32, #tpu.memory_space<vmem>>, %arg3: memref<32x128xi8, #tpu.memory_space<vmem>>, %arg4: memref<2x128xf32, #tpu.memory_space<vmem>>, %arg5: memref<16x128xf32, #tpu.memory_space<vmem>>, %arg6: memref<16x32xbf16, #tpu.memory_space<vmem>>, %arg7: memref<16x1xf32, #tpu.memory_space<vmem>>) attributes {dimension_semantics = [#tpu.dimension_semantics<parallel>, #tpu.dimension_semantics<arbitrary>], iteration_bounds = array<i64: 1, 1>, scalar_prefetch = 0 : i64, scratch_operands = 2 : i64, tpu.core_type = #tpu.core_type<tc>, window_params = [{transform_indices = @transform_0, window_bounds = array<i64: 16, 32>}, {transform_indices = @transform_1, window_bounds = array<i64: 32, 128>}, {pipeline_mode = #tpu.pipeline_mode<synchronous>, transform_indices = @transform_2, window_bounds = array<i64: 2, 128>}, {transform_indices = @transform_3, window_bounds = array<i64: 16, 128>}]} {
    %c0_i32 = arith.constant 0 : i32
    %0 = arith.cmpi eq, %arg1, %c0_i32 : i32
    %1 = arith.extui %0 : i1 to i32
    %c0_i32_0 = arith.constant 0 : i32
    %2 = arith.cmpi ne, %1, %c0_i32_0 : i32
    scf.if %2 {
      %c0_9 = arith.constant 0 : index
      %c0_10 = arith.constant 0 : index
      %21 = vector.load %arg2[%c0_9, %c0_10] : memref<16x32xf32, #tpu.memory_space<vmem>>, vector<16x32xf32>
      %22 = math.absf %21 : vector<16x32xf32>
      %cst_11 = arith.constant dense<0xFF800000> : vector<16xf32>
      %23 = vector.multi_reduction <maximumf>, %22, %cst_11 [1] : vector<16x32xf32> to vector<16xf32>
      %24 = vector.shape_cast %23 : vector<16xf32> to vector<16x1xf32>
      %cst_12 = arith.constant 9.99999993E-9 : f32
      %25 = vector.broadcast %cst_12 : f32 to vector<16x1xf32>
      %26 = arith.maximumf %24, %25 : vector<16x1xf32>
      %cst_13 = arith.constant 1.270000e+02 : f32
      %27 = vector.broadcast %cst_13 : f32 to vector<16x1xf32>
      %28 = arith.divf %27, %26 : vector<16x1xf32>
      %29 = vector.broadcast %28 : vector<16x1xf32> to vector<16x32xf32>
      %30 = arith.mulf %21, %29 : vector<16x32xf32>
      %31 = math.roundeven %30 : vector<16x32xf32>
      %cst_14 = arith.constant -1.270000e+02 : f32
      %cst_15 = arith.constant 1.270000e+02 : f32
      %32 = vector.broadcast %cst_14 : f32 to vector<16x32xf32>
      %33 = arith.maximumf %32, %31 : vector<16x32xf32>
      %34 = vector.broadcast %cst_15 : f32 to vector<16x32xf32>
      %35 = arith.minimumf %34, %33 : vector<16x32xf32>
      %36 = arith.truncf %35 : vector<16x32xf32> to vector<16x32xbf16>
      %c0_16 = arith.constant 0 : index
      %c0_17 = arith.constant 0 : index
      %37 = vector.load %arg6[%c0_16, %c0_17] : memref<16x32xbf16, #tpu.memory_space<vmem>>, vector<16x32xbf16>
      tpu.vector_store %arg6[%c0_16, %c0_17], %36 {strides = array<i32>} : memref<16x32xbf16, #tpu.memory_space<vmem>>, vector<16x32xbf16>,
      %cst_18 = arith.constant 0.00787401571 : f32
      %38 = vector.broadcast %cst_18 : f32 to vector<16x1xf32>
      %39 = arith.mulf %26, %38 : vector<16x1xf32>
      %c0_19 = arith.constant 0 : index
      %c0_20 = arith.constant 0 : index
      %40 = vector.load %arg7[%c0_19, %c0_20] : memref<16x1xf32, #tpu.memory_space<vmem>>, vector<16x1xf32>
      tpu.vector_store %arg7[%c0_19, %c0_20], %39 {strides = array<i32>} : memref<16x1xf32, #tpu.memory_space<vmem>>, vector<16x1xf32>,
    } else {
    }
    %c128_i32 = arith.constant 128 : i32
    %3 = arith.muli %arg1, %c128_i32 : i32
    %4 = tpu.assume_multiple %3, 128 : i32
    %c0 = arith.constant 0 : index
    %5 = arith.index_cast %4 : i32 to index
    %6 = vector.load %arg4[%c0, %5] : memref<2x128xf32, #tpu.memory_space<vmem>>, vector<2x128xf32>
    %7 = vector.extract_strided_slice %6 {offsets = [0, 0], sizes = [1, 128], strides = [1, 1]} : vector<2x128xf32> to vector<1x128xf32>
    %8 = vector.extract_strided_slice %6 {offsets = [1, 0], sizes = [1, 128], strides = [1, 1]} : vector<2x128xf32> to vector<1x128xf32>
    %c0_1 = arith.constant 0 : index
    %c0_2 = arith.constant 0 : index
    %9 = vector.load %arg6[%c0_1, %c0_2] : memref<16x32xbf16, #tpu.memory_space<vmem>>, vector<16x32xbf16>
    %c0_3 = arith.constant 0 : index
    %c0_4 = arith.constant 0 : index
    %10 = vector.load %arg3[%c0_3, %c0_4] : memref<32x128xi8, #tpu.memory_space<vmem>>, vector<32x128xi8>
    %11 = arith.sitofp %10 : vector<32x128xi8> to vector<32x128xbf16>
    %cst = arith.constant dense<0.000000e+00> : vector<16x128xf32>
    %12 = tpu.matmul %9, %11, %cst {dimension_numbers = #tpu.dot_dimension_numbers<[1], [0], [0], [1], [0, 0, 1, 1], [], []>} : vector<16x32xbf16>, vector<32x128xbf16>, vector<16x128xf32> -> vector<16x128xf32>
    %c0_5 = arith.constant 0 : index
    %c0_6 = arith.constant 0 : index
    %13 = vector.load %arg7[%c0_5, %c0_6] : memref<16x1xf32, #tpu.memory_space<vmem>>, vector<16x1xf32>
    %14 = vector.broadcast %13 : vector<16x1xf32> to vector<16x128xf32>
    %15 = arith.mulf %12, %14 : vector<16x128xf32>
    %16 = vector.broadcast %7 : vector<1x128xf32> to vector<16x128xf32>
    %17 = arith.mulf %15, %16 : vector<16x128xf32>
    %18 = vector.broadcast %8 : vector<1x128xf32> to vector<16x128xf32>
    %19 = arith.addf %17, %18 : vector<16x128xf32>
    %c0_7 = arith.constant 0 : index
    %c0_8 = arith.constant 0 : index
    %20 = vector.load %arg5[%c0_7, %c0_8] : memref<16x128xf32, #tpu.memory_space<vmem>>, vector<16x128xf32>
    tpu.vector_store %arg5[%c0_7, %c0_8], %19 {strides = array<i32>} : memref<16x128xf32, #tpu.memory_space<vmem>>, vector<16x128xf32>,
    return
  }
  func.func @transform_0(%arg0: i32, %arg1: i32) -> (i32, i32) {
    %c0_i32 = arith.constant 0 : i32
    %c0_i32_0 = arith.constant 0 : i32
    return %arg0, %c0_i32 : i32, i32
  }
  func.func @transform_1(%arg0: i32, %arg1: i32) -> (i32, i32) {
    %c0_i32 = arith.constant 0 : i32
    %c0_i32_0 = arith.constant 0 : i32
    return %c0_i32, %arg1 : i32, i32
  }
  func.func @transform_2(%arg0: i32, %arg1: i32) -> (i32, i32) {
    %c0_i32 = arith.constant 0 : i32
    %c0_i32_0 = arith.constant 0 : i32
    %c0_i32_1 = arith.constant 0 : i32
    return %c0_i32, %c0_i32_0 : i32, i32
  }
  func.func @transform_3(%arg0: i32, %arg1: i32) -> (i32, i32) {
    %c0_i32 = arith.constant 0 : i32
    return %arg0, %arg1 : i32, i32
  }
}

module attributes {stable_mosaic.version = 11 : i64} {
  func.func @kernel(%arg0: i32, %arg1: i32, %arg2: memref<16x32xf32, #tpu.memory_space<vmem>>, %arg3: memref<32x128xi8, #tpu.memory_space<vmem>>, %arg4: memref<2x128xf32, #tpu.memory_space<vmem>>, %arg5: memref<16x128xf32, #tpu.memory_space<vmem>>, %arg6: memref<16x32xbf16, #tpu.memory_space<vmem>>, %arg7: memref<16x1xf32, #tpu.memory_space<vmem>>) attributes {dimension_semantics = [#tpu.dimension_semantics<parallel>, #tpu.dimension_semantics<arbitrary>], iteration_bounds = array<i64: 1, 1>, scalar_prefetch = 0 : i64, scratch_operands = 2 : i64, tpu.core_type = #tpu.core_type<tc>, window_params = [{transform_indices = @transform_0, window_bounds = array<i64: 16, 32>}, {transform_indices = @transform_1, window_bounds = array<i64: 32, 128>}, {pipeline_mode = #tpu.pipeline_mode<synchronous>, transform_indices = @transform_2, window_bounds = array<i64: 2, 128>}, {transform_indices = @transform_3, window_bounds = array<i64: 16, 128>}]} {
    %c0_i32 = arith.constant 0 : i32
    %0 = arith.cmpi eq, %arg1, %c0_i32 : i32
    %1 = arith.extui %0 : i1 to i32
    %c0_i32_0 = arith.constant 0 : i32
    %2 = arith.cmpi ne, %1, %c0_i32_0 : i32
    scf.if %2 {
      %c0_9 = arith.constant 0 : index
      %c0_10 = arith.constant 0 : index
      %21 = vector.load %arg2[%c0_9, %c0_10] : memref<16x32xf32, #tpu.memory_space<vmem>>, vector<16x32xf32>
      %22 = math.absf %21 : vector<16x32xf32>
      %cst_11 = arith.constant dense<0xFF800000> : vector<16xf32>
      %23 = vector.multi_reduction <maximumf>, %22, %cst_11 [1] : vector<16x32xf32> to vector<16xf32>
      %24 = vector.shape_cast %23 : vector<16xf32> to vector<16x1xf32>
      %cst_12 = arith.constant 9.99999993E-9 : f32
      %25 = vector.broadcast %cst_12 : f32 to vector<16x1xf32>
      %26 = arith.maximumf %24, %25 : vector<16x1xf32>
      %cst_13 = arith.constant 1.270000e+02 : f32
      %27 = vector.broadcast %cst_13 : f32 to vector<16x1xf32>
      %28 = arith.divf %27, %26 : vector<16x1xf32>
      %29 = vector.broadcast %28 : vector<16x1xf32> to vector<16x32xf32>
      %30 = arith.mulf %21, %29 : vector<16x32xf32>
      %31 = math.roundeven %30 : vector<16x32xf32>
      %cst_14 = arith.constant -1.270000e+02 : f32
      %cst_15 = arith.constant 1.270000e+02 : f32
      %32 = vector.broadcast %cst_14 : f32 to vector<16x32xf32>
      %33 = arith.maximumf %32, %31 : vector<16x32xf32>
      %34 = vector.broadcast %cst_15 : f32 to vector<16x32xf32>
      %35 = arith.minimumf %34, %33 : vector<16x32xf32>
      %36 = arith.truncf %35 : vector<16x32xf32> to vector<16x32xbf16>
      %c0_16 = arith.constant 0 : index
      %c0_17 = arith.constant 0 : index
      %37 = vector.load %arg6[%c0_16, %c0_17] : memref<16x32xbf16, #tpu.memory_space<vmem>>, vector<16x32xbf16>
      tpu.vector_store %arg6[%c0_16, %c0_17], %36 {strides = array<i32>} : memref<16x32xbf16, #tpu.memory_space<vmem>>, vector<16x32xbf16>,
      %cst_18 = arith.constant 0.00787401571 : f32
      %38 = vector.broadcast %cst_18 : f32 to vector<16x1xf32>
      %39 = arith.mulf %26, %38 : vector<16x1xf32>
      %c0_19 = arith.constant 0 : index
      %c0_20 = arith.constant 0 : index
      %40 = vector.load %arg7[%c0_19, %c0_20] : memref<16x1xf32, #tpu.memory_space<vmem>>, vector<16x1xf32>
      tpu.vector_store %arg7[%c0_19, %c0_20], %39 {strides = array<i32>} : memref<16x1xf32, #tpu.memory_space<vmem>>, vector<16x1xf32>,
    } else {
    }
    %c128_i32 = arith.constant 128 : i32
    %3 = arith.muli %arg1, %c128_i32 : i32
    %4 = tpu.assume_multiple %3, 128 : i32
    %c0 = arith.constant 0 : index
    %5 = arith.index_cast %4 : i32 to index
    %6 = vector.load %arg4[%c0, %5] : memref<2x128xf32, #tpu.memory_space<vmem>>, vector<2x128xf32>
    %7 = vector.extract_strided_slice %6 {offsets = [0, 0], sizes = [1, 128], strides = [1, 1]} : vector<2x128xf32> to vector<1x128xf32>
    %8 = vector.extract_strided_slice %6 {offsets = [1, 0], sizes = [1, 128], strides = [1, 1]} : vector<2x128xf32> to vector<1x128xf32>
    %c0_1 = arith.constant 0 : index
    %c0_2 = arith.constant 0 : index
    %9 = vector.load %arg6[%c0_1, %c0_2] : memref<16x32xbf16, #tpu.memory_space<vmem>>, vector<16x32xbf16>
    %c0_3 = arith.constant 0 : index
    %c0_4 = arith.constant 0 : index
    %10 = vector.load %arg3[%c0_3, %c0_4] : memref<32x128xi8, #tpu.memory_space<vmem>>, vector<32x128xi8>
    %11 = arith.sitofp %10 : vector<32x128xi8> to vector<32x128xbf16>
    %cst = arith.constant dense<0.000000e+00> : vector<16x128xf32>
    %12 = tpu.matmul %9, %11, %cst {dimension_numbers = #tpu.dot_dimension_numbers<[1], [0], [0], [1], [0, 0, 1, 1], [], []>} : vector<16x32xbf16>, vector<32x128xbf16>, vector<16x128xf32> -> vector<16x128xf32>
    %c0_5 = arith.constant 0 : index
    %c0_6 = arith.constant 0 : index
    %13 = vector.load %arg7[%c0_5, %c0_6] : memref<16x1xf32, #tpu.memory_space<vmem>>, vector<16x1xf32>
    %14 = vector.broadcast %13 : vector<16x1xf32> to vector<16x128xf32>
    %15 = arith.mulf %12, %14 : vector<16x128xf32>
    %16 = vector.broadcast %7 : vector<1x128xf32> to vector<16x128xf32>
    %17 = arith.mulf %15, %16 : vector<16x128xf32>
    %18 = vector.broadcast %8 : vector<1x128xf32> to vector<16x128xf32>
    %19 = arith.addf %17, %18 : vector<16x128xf32>
    %c0_7 = arith.constant 0 : index
    %c0_8 = arith.constant 0 : index
    %20 = vector.load %arg5[%c0_7, %c0_8] : memref<16x128xf32, #tpu.memory_space<vmem>>, vector<16x128xf32>
    tpu.vector_store %arg5[%c0_7, %c0_8], %19 {strides = array<i32>} : memref<16x128xf32, #tpu.memory_space<vmem>>, vector<16x128xf32>,
    return
  }
  func.func @transform_0(%arg0: i32, %arg1: i32) -> (i32, i32) {
    %c0_i32 = arith.constant 0 : i32
    %c0_i32_0 = arith.constant 0 : i32
    return %arg0, %c0_i32 : i32, i32
  }
  func.func @transform_1(%arg0: i32, %arg1: i32) -> (i32, i32) {
    %c0_i32 = arith.constant 0 : i32
    %c0_i32_0 = arith.constant 0 : i32
    return %c0_i32, %arg1 : i32, i32
  }
  func.func @transform_2(%arg0: i32, %arg1: i32) -> (i32, i32) {
    %c0_i32 = arith.constant 0 : i32
    %c0_i32_0 = arith.constant 0 : i32
    %c0_i32_1 = arith.constant 0 : i32
    return %c0_i32, %c0_i32_0 : i32, i32
  }
  func.func @transform_3(%arg0: i32, %arg1: i32) -> (i32, i32) {
    %c0_i32 = arith.constant 0 : i32
    return %arg0, %arg1 : i32, i32
  }
}

</mosaic_0001>

<bundles_post_ra>
// kernel: tpu_custom_call.1
= control target key start
LH: loop header
LB: loop body
LE: loop exit
PB: predicated region body
PF: predicated region fallthrough
CT: control target
= control target key end

     0   :  { %8 = vsyncpa [#allocation5], 0  ;;  %s401_s0 = inlined_call_operand.hbm [shape: f32[16,32], index: 0, kind: input, shape index: {}]   ;;  %s402_s1 = inlined_call_operand.hbm [shape: s8[32,128], index: 1, kind: input, shape index: {}]   ;;  %s403_s2 = inlined_call_operand.hbm [shape: f32[2,128], index: 2, kind: input, shape index: {}]   ;;  %s404_s3 = inlined_call_operand.hbm [shape: f32[16,128], index: 3, kind: output, shape index: {}]  }
   0x1   :  { %9 = vsyncpa [#allocation8], 0  ;;  %s29_s14 = sshll.u32 %s402_s1, 4  ;;  %s30_s14 = int_to_ptr.hbm [resolvable:$true] %s29_s14 }
   0x2   :  { %10 = vsyncpa [#allocation6], 0  ;;  %s347_s15 = smov [#allocation7]   ;;  %s15_s19 = sshll.u32 %s401_s0, 4  ;;  %s16_s19 = int_to_ptr.hbm [resolvable:$true] %s15_s19 }
   0x3   :  { %s31_s16 = sshll.u32 %s347_s15, 4  ;;  %s348_s20 = smov [#allocation4]   ;;  %s32_s16 = int_to_ptr.vmem [resolvable:$true] %s31_s16 }
   0x4   :  { %34 = dma.hbm_to_vmem [thread:$0]  %s30_s14, 128, %s32_s16, [#allocation8]  }
   0x5   :  { %s17_s21 = sshll.u32 %s348_s20, 4  ;;  %s349_s22 = smov 128   ;;  %s18_s21 = int_to_ptr.vmem [resolvable:$true] %s17_s21 }
   0x6   :  { %s350_s23 = smov 8   ;;  %s40_s25 = sshll.u32 %s403_s2, 4  ;;  %s41_s25 = int_to_ptr.hbm [resolvable:$true] %s40_s25 }
   0x7   :  { %23 = dma.hbm_to_vmem [thread:$0]  %s16_s19, 256, %s18_s21, [#allocation5], %s349_s22, %s349_s22, %s350_s23  }
   0x8   :  { %s351_s26 = smov [#allocation9]  }
   0x9   :  { %s42_s27 = sshll.u32 %s351_s26, 4  ;;  %s43_s27 = int_to_ptr.vmem [resolvable:$true] %s42_s27 }
   0xa   :  { %45 = dma.hbm_to_vmem [thread:$0]  %s41_s25, 32, %s43_s27, [#allocation8]  }
   0xb   :  { %341 = dma.done.wait [#allocation5], 256  }
   0xc   :  { %342 = vsyncadd [#allocation5], 4294967040 }
   0xd   :  { %343 = dma.done.wait [#allocation8], 160  }
   0xe   :  { %344 = vsyncadd [#allocation8], 4294967136  ;;  %v63_v0 = vld [vmem:[#allocation4] sm:$0xff]  ;;  %vm67_vm0 = vcmask 261120   ;;  %v386_v2 = vld [vmem:[#allocation4 + $0x8] sm:$0xff]  ;;  %v352_v6 = vmov 0  }
   0xf   :  { %v65_v1 = vand.u32 2147483647, %v63_v0  ;;  %v66_v4 = vand.u32 2147483647, %v386_v2  ;;  %239 = vset.pattern.permute.xlu1 %v352_v6  ;;  %240 = vset.pattern.permute.xlu0 %v352_v6  ;;  %vm121_vm1 = vcmask 7168   ;;  %v131_v13 = vld [vmem:[#allocation7] sm:$0xff] }
  0x10   :  { %v134_v15 = vunpack.c.2.s8 %v131_v13  ;;  %v135_v16 = vunpack.c.3.s8 %v131_v13  ;;  %v132_v23 = vunpack.c.0.s8 %v131_v13  ;;  %v133_v24 = vunpack.c.1.s8 %v131_v13  ;;  %s353_s0 = smov [#allocation10]   ;;  %s193_s30 = sshll.u32 %s404_s3, 4  ;;  %s194_s30 = int_to_ptr.hbm [resolvable:$true] %s193_s30 }
  0x11   :  { %v68_v3 = vsel %vm67_vm0, %v65_v1, -inf  ;;  %v71_v5 = vsel %vm67_vm0, %v66_v4, -inf  ;;  %vm116_vm11 = vcmask 257024   ;;  %s191_s2 = sshll.u32 %s353_s0, 4  ;;  %s192_s2 = int_to_ptr.vmem [resolvable:$true] %s191_s2 }
  0x12   :  { %69 = vmax.xlane.f32.xlu0 %v68_v3  ;;  %v138_v19 = vcvt.s32.f32 %v134_v15  ;;  %v139_v20 = vcvt.s32.f32 %v135_v16  ;;  %v136_v28 = vcvt.s32.f32 %v132_v23  ;;  %v137_v29 = vcvt.s32.f32 %v133_v24 }
  0x14   :  { %v141_v27 = vpack.c.bf16 %v139_v20, %v138_v19  ;;  %v140_v33 = vpack.c.bf16 %v137_v29, %v136_v28 }
  0x16   :  { %157 = vmatpush.bf16.msra.mxu0 %v141_v27 }
  0x1a   :  { %72 = vmax.xlane.f32.xlu0 %v71_v5  ;;  %158 = vmatpush.bf16.msra.mxu0 %v140_v33 }
  0x85   :  { %v70_v7 = vpop.xlane.xlu0 %69 }
  0x86   :  { %v74_v8 = vmax.f32 %v70_v7, 1e-08 }
  0x88   :  { %241 = vrcp.f32 %v74_v8  ;;  %v119_v9 = vmul.f32 0.007874016, %v74_v8  ;;  %v87_v21 = vand.u32 2147483648, %v74_v8  ;;  %v85_v26 = vand.u32 2147483647, %v74_v8 }
  0x89   :  { %vm81_vm3 = vweird.f32 %v74_v8 }
  0x8a   :  { %122 = vst.msk [vmem:[#allocation3] sm:$0xff] %vm121_vm1, %v119_v9  ;;  %v88_v32 = vor.u32 1.1754944e-38, %v87_v21  ;;  %vm86_vm5 = vcmp.eq.f32.partialorder %v85_v26, 8.507059e+37 }
  0x8d   :  { %v73_v10 = vpop.xlane.xlu0 %72 }
  0x8e   :  { %v242_v11 = vpop.eup %241  ;;  %v75_v12 = vmax.f32 %v73_v10, 1e-08 }
  0x8f   :  { %v77_v14 = vmul.f32 %v242_v11, %v74_v8  ;;  %vm82_vm2 = vweird.f32 %v242_v11 }
  0x90   :  { %243 = vrcp.f32 %v75_v12  ;;  %v120_v18 = vmul.f32 0.007874016, %v75_v12  ;;  %vm83_vm4 = vmor %vm81_vm3, %vm82_vm2  ;;  %v102_v39 = vand.u32 2147483648, %v75_v12  ;;  %v100_v43 = vand.u32 2147483647, %v75_v12 }
  0x91   :  { %v78_v17 = vsub.f32 1.0, %v77_v14  ;;  %v165_v22 = vld [vmem:[#allocation3] sm:$0xff]  ;;  %vm96_vm7 = vweird.f32 %v75_v12 }
  0x92   :  { %123 = vst.msk [vmem:[#allocation3 + $0x8] sm:$0xff] %vm121_vm1, %v120_v18  ;;  %169 = vperm.xlu1 %239, %v165_v22   ;;  %v103_v46 = vor.u32 1.1754944e-38, %v102_v39  ;;  %vm101_vm9 = vcmp.eq.f32.partialorder %v100_v43, 8.507059e+37 }
  0x93   :  { %v79_v25 = vmul.f32 %v242_v11, %v78_v17 }
  0x95   :  { %v80_v30 = vadd.f32 %v242_v11, %v79_v25 }
  0x96   :  { %v244_v31 = vpop.eup %243 }
  0x97   :  { %v84_v34 = vsel %vm83_vm4, %v242_v11, %v80_v30  ;;  %v92_v35 = vmul.f32 %v244_v31, %v75_v12  ;;  %vm97_vm6 = vweird.f32 %v244_v31 }
  0x98   :  { %v89_v36 = vsel %vm86_vm5, %v88_v32, %v84_v34  ;;  %vm98_vm8 = vmor %vm96_vm7, %vm97_vm6 }
  0x99   :  { %v90_v37 = vmul.f32 127.0, %v89_v36  ;;  %v93_v38 = vsub.f32 1.0, %v92_v35  ;;  %v166_v40 = vld [vmem:[#allocation3 + $0x8] sm:$0xff] }
  0x9a   :  { %174 = vperm.xlu1 %239, %v166_v40  }
  0x9b   :  { %v106_v41 = vmul.f32 %v90_v37, %v63_v0  ;;  %v94_v42 = vmul.f32 %v244_v31, %v93_v38 }
  0x9d   :  { %v218_v44 = vcvt.f32.s32 %v106_v41  ;;  %v95_v45 = vadd.f32 %v244_v31, %v94_v42  ;;  %v216_v49 = vand.u32 2147483647, %v106_v41  ;;  %v221_v52 = vand.u32 2147483648, %v106_v41 }
  0x9f   :  { %v219_v47 = vcvt.s32.f32 %v218_v44  ;;  %v99_v48 = vsel %vm98_vm8, %v244_v31, %v95_v45  ;;  %vm217_vm10 = vcmp.lt.f32.partialorder %v216_v49, 8388608.0 }
  0xa0   :  { %v104_v50 = vsel %vm101_vm9, %v103_v46, %v99_v48 }
  0xa1   :  { %v220_v51 = vand.u32 2147483647, %v219_v47  ;;  %v105_v53 = vmul.f32 127.0, %v104_v50 }
  0xa3   :  { %v222_v54 = vor.u32 %v221_v52, %v220_v51  ;;  %v107_v55 = vmul.f32 %v105_v53, %v386_v2  ;;  %v128_v2 = vld [vmem:[#allocation9] sm:$0x3] }
  0xa4   :  { %v179_v7 = vperm.slane %v128_v2, 0  ;;  %v182_v10 = vperm.slane %v128_v2, 1 }
  0xa5   :  { %v223_v56 = vsel %vm217_vm10, %v222_v54, %v106_v41  ;;  %v226_v57 = vcvt.f32.s32 %v107_v55  ;;  %v224_v61 = vand.u32 2147483647, %v107_v55  ;;  %v229_v63 = vand.u32 2147483648, %v107_v55 }
  0xa6   :  { %v208_v58 = vclamps-f32 %v223_v56, 127.0 }
  0xa7   :  { %v227_v59 = vcvt.s32.f32 %v226_v57  ;;  %vm225_vm12 = vcmp.lt.f32.partialorder %v224_v61, 8388608.0 }
  0xa8   :  { %v114_v60 = vpack.c.bf16 %v208_v58, %v208_v58 }
  0xa9   :  { %v228_v62 = vand.u32 2147483647, %v227_v59 }
  0xaa   :  { %117 = vst.msk [vmem:[#allocation2] sm:$0xf] %vm116_vm11, %v114_v60 }
  0xab   :  { %v230_v0 = vor.u32 %v229_v63, %v228_v62 }
  0xad   :  { %v231_v1 = vsel %vm225_vm12, %v230_v0, %v107_v55 }
  0xae   :  { %v209_v3 = vclamps-f32 %v231_v1, 127.0 }
  0xb0   :  { %v115_v4 = vpack.c.bf16 %v209_v3, %v209_v3 }
  0xb2   :  { %118 = vst.msk [vmem:[#allocation2 + $0x4] sm:$0xf] %vm116_vm11, %v115_v4 }
  0xb9   :  { %v215_v5 = vld [vmem:[#allocation2] sm:$0xff] }
  0xba   :  { %214 = vmatmul.msk.bf16.vlgmr.msra.gmra.mxu0 %vm67_vm0, %v215_v5 }
 0x104   :  { %v170_v6 = vpop.permute.xlu1 %169 }
 0x10c   :  { %v175_v13 = vpop.permute.xlu1 %174 }
 0x137   :  { %v160_v8 = vpop.f32.mrf.mxu0 }
 0x138   :  { %v177_v9 = vmul.f32 %v170_v6, %v160_v8 }
 0x13a   :  { %v180_v11 = vmul.f32 %v179_v7, %v177_v9 }
 0x13c   :  { %v183_v12 = vadd.f32 %v182_v10, %v180_v11 }
 0x13e   :  { %185 = vst [vmem:[#allocation10] sm:$0xff] %v183_v12 }
 0x13f   :  { %v162_v14 = vpop.f32.mrf.mxu0 }
 0x140   :  { %v178_v15 = vmul.f32 %v175_v13, %v162_v14 }
 0x142   :  { %v181_v16 = vmul.f32 %v179_v7, %v178_v15 }
 0x144   :  { %v184_v17 = vadd.f32 %v182_v10, %v181_v16 }
 0x146   :  { %186 = vst [vmem:[#allocation10 + $0x8] sm:$0xff] %v184_v17 }
 0x147   :  { %199 = dma.vmem_to_hbm [thread:$0]  %s192_s2, 256, %s194_s30, [#allocation6], %s349_s22, %s349_s22, %s350_s23  }
 0x148   :  { %345 = dma.done.wait [#allocation6], 256  }
 0x149   :  { %346 = vsyncadd [#allocation6], 4294967040 }
 0x14a   :  { %204 = vsyncpa [#allocation5], 1 }
 0x14b   :  { %205 = vsyncpa [#allocation8], 1 }
 0x14c   :  { %206 = vsyncpa [#allocation6], 1 }

// kernel: tpu_custom_call.1
= control target key start
LH: loop header
LB: loop body
LE: loop exit
PB: predicated region body
PF: predicated region fallthrough
CT: control target
= control target key end

     0   :  { %8 = vsyncpa [#allocation5], 0  ;;  %s401_s0 = inlined_call_operand.hbm [shape: f32[16,32], index: 0, kind: input, shape index: {}]   ;;  %s402_s1 = inlined_call_operand.hbm [shape: s8[32,128], index: 1, kind: input, shape index: {}]   ;;  %s403_s2 = inlined_call_operand.hbm [shape: f32[2,128], index: 2, kind: input, shape index: {}]   ;;  %s404_s3 = inlined_call_operand.hbm [shape: f32[16,128], index: 3, kind: output, shape index: {}]  }
   0x1   :  { %9 = vsyncpa [#allocation8], 0  ;;  %s29_s14 = sshll.u32 %s402_s1, 4  ;;  %s30_s14 = int_to_ptr.hbm [resolvable:$true] %s29_s14 }
   0x2   :  { %10 = vsyncpa [#allocation6], 0  ;;  %s347_s15 = smov [#allocation7]   ;;  %s15_s19 = sshll.u32 %s401_s0, 4  ;;  %s16_s19 = int_to_ptr.hbm [resolvable:$true] %s15_s19 }
   0x3   :  { %s31_s16 = sshll.u32 %s347_s15, 4  ;;  %s348_s20 = smov [#allocation4]   ;;  %s32_s16 = int_to_ptr.vmem [resolvable:$true] %s31_s16 }
   0x4   :  { %34 = dma.hbm_to_vmem [thread:$0]  %s30_s14, 128, %s32_s16, [#allocation8]  }
   0x5   :  { %s17_s21 = sshll.u32 %s348_s20, 4  ;;  %s349_s22 = smov 128   ;;  %s18_s21 = int_to_ptr.vmem [resolvable:$true] %s17_s21 }
   0x6   :  { %s350_s23 = smov 8   ;;  %s40_s25 = sshll.u32 %s403_s2, 4  ;;  %s41_s25 = int_to_ptr.hbm [resolvable:$true] %s40_s25 }
   0x7   :  { %23 = dma.hbm_to_vmem [thread:$0]  %s16_s19, 256, %s18_s21, [#allocation5], %s349_s22, %s349_s22, %s350_s23  }
   0x8   :  { %s351_s26 = smov [#allocation9]  }
   0x9   :  { %s42_s27 = sshll.u32 %s351_s26, 4  ;;  %s43_s27 = int_to_ptr.vmem [resolvable:$true] %s42_s27 }
   0xa   :  { %45 = dma.hbm_to_vmem [thread:$0]  %s41_s25, 32, %s43_s27, [#allocation8]  }
   0xb   :  { %341 = dma.done.wait [#allocation5], 256  }
   0xc   :  { %342 = vsyncadd [#allocation5], 4294967040 }
   0xd   :  { %343 = dma.done.wait [#allocation8], 160  }
   0xe   :  { %344 = vsyncadd [#allocation8], 4294967136  ;;  %v63_v0 = vld [vmem:[#allocation4] sm:$0xff]  ;;  %vm67_vm0 = vcmask 261120   ;;  %v386_v2 = vld [vmem:[#allocation4 + $0x8] sm:$0xff]  ;;  %v352_v6 = vmov 0  }
   0xf   :  { %v65_v1 = vand.u32 2147483647, %v63_v0  ;;  %v66_v4 = vand.u32 2147483647, %v386_v2  ;;  %239 = vset.pattern.permute.xlu1 %v352_v6  ;;  %240 = vset.pattern.permute.xlu0 %v352_v6  ;;  %vm121_vm1 = vcmask 7168   ;;  %v131_v13 = vld [vmem:[#allocation7] sm:$0xff] }
  0x10   :  { %v134_v15 = vunpack.c.2.s8 %v131_v13  ;;  %v135_v16 = vunpack.c.3.s8 %v131_v13  ;;  %v132_v23 = vunpack.c.0.s8 %v131_v13  ;;  %v133_v24 = vunpack.c.1.s8 %v131_v13  ;;  %s353_s0 = smov [#allocation10]   ;;  %s193_s30 = sshll.u32 %s404_s3, 4  ;;  %s194_s30 = int_to_ptr.hbm [resolvable:$true] %s193_s30 }
  0x11   :  { %v68_v3 = vsel %vm67_vm0, %v65_v1, -inf  ;;  %v71_v5 = vsel %vm67_vm0, %v66_v4, -inf  ;;  %vm116_vm11 = vcmask 257024   ;;  %s191_s2 = sshll.u32 %s353_s0, 4  ;;  %s192_s2 = int_to_ptr.vmem [resolvable:$true] %s191_s2 }
  0x12   :  { %69 = vmax.xlane.f32.xlu0 %v68_v3  ;;  %v138_v19 = vcvt.s32.f32 %v134_v15  ;;  %v139_v20 = vcvt.s32.f32 %v135_v16  ;;  %v136_v28 = vcvt.s32.f32 %v132_v23  ;;  %v137_v29 = vcvt.s32.f32 %v133_v24 }
  0x14   :  { %v141_v27 = vpack.c.bf16 %v139_v20, %v138_v19  ;;  %v140_v33 = vpack.c.bf16 %v137_v29, %v136_v28 }
  0x16   :  { %157 = vmatpush.bf16.msra.mxu0 %v141_v27 }
  0x1a   :  { %72 = vmax.xlane.f32.xlu0 %v71_v5  ;;  %158 = vmatpush.bf16.msra.mxu0 %v140_v33 }
  0x85   :  { %v70_v7 = vpop.xlane.xlu0 %69 }
  0x86   :  { %v74_v8 = vmax.f32 %v70_v7, 1e-08 }
  0x88   :  { %241 = vrcp.f32 %v74_v8  ;;  %v119_v9 = vmul.f32 0.007874016, %v74_v8  ;;  %v87_v21 = vand.u32 2147483648, %v74_v8  ;;  %v85_v26 = vand.u32 2147483647, %v74_v8 }
  0x89   :  { %vm81_vm3 = vweird.f32 %v74_v8 }
  0x8a   :  { %122 = vst.msk [vmem:[#allocation3] sm:$0xff] %vm121_vm1, %v119_v9  ;;  %v88_v32 = vor.u32 1.1754944e-38, %v87_v21  ;;  %vm86_vm5 = vcmp.eq.f32.partialorder %v85_v26, 8.507059e+37 }
  0x8d   :  { %v73_v10 = vpop.xlane.xlu0 %72 }
  0x8e   :  { %v242_v11 = vpop.eup %241  ;;  %v75_v12 = vmax.f32 %v73_v10, 1e-08 }
  0x8f   :  { %v77_v14 = vmul.f32 %v242_v11, %v74_v8  ;;  %vm82_vm2 = vweird.f32 %v242_v11 }
  0x90   :  { %243 = vrcp.f32 %v75_v12  ;;  %v120_v18 = vmul.f32 0.007874016, %v75_v12  ;;  %vm83_vm4 = vmor %vm81_vm3, %vm82_vm2  ;;  %v102_v39 = vand.u32 2147483648, %v75_v12  ;;  %v100_v43 = vand.u32 2147483647, %v75_v12 }
  0x91   :  { %v78_v17 = vsub.f32 1.0, %v77_v14  ;;  %v165_v22 = vld [vmem:[#allocation3] sm:$0xff]  ;;  %vm96_vm7 = vweird.f32 %v75_v12 }
  0x92   :  { %123 = vst.msk [vmem:[#allocation3 + $0x8] sm:$0xff] %vm121_vm1, %v120_v18  ;;  %169 = vperm.xlu1 %239, %v165_v22   ;;  %v103_v46 = vor.u32 1.1754944e-38, %v102_v39  ;;  %vm101_vm9 = vcmp.eq.f32.partialorder %v100_v43, 8.507059e+37 }
  0x93   :  { %v79_v25 = vmul.f32 %v242_v11, %v78_v17 }
  0x95   :  { %v80_v30 = vadd.f32 %v242_v11, %v79_v25 }
  0x96   :  { %v244_v31 = vpop.eup %243 }
  0x97   :  { %v84_v34 = vsel %vm83_vm4, %v242_v11, %v80_v30  ;;  %v92_v35 = vmul.f32 %v244_v31, %v75_v12  ;;  %vm97_vm6 = vweird.f32 %v244_v31 }
  0x98   :  { %v89_v36 = vsel %vm86_vm5, %v88_v32, %v84_v34  ;;  %vm98_vm8 = vmor %vm96_vm7, %vm97_vm6 }
  0x99   :  { %v90_v37 = vmul.f32 127.0, %v89_v36  ;;  %v93_v38 = vsub.f32 1.0, %v92_v35  ;;  %v166_v40 = vld [vmem:[#allocation3 + $0x8] sm:$0xff] }
  0x9a   :  { %174 = vperm.xlu1 %239, %v166_v40  }
  0x9b   :  { %v106_v41 = vmul.f32 %v90_v37, %v63_v0  ;;  %v94_v42 = vmul.f32 %v244_v31, %v93_v38 }
  0x9d   :  { %v218_v44 = vcvt.f32.s32 %v106_v41  ;;  %v95_v45 = vadd.f32 %v244_v31, %v94_v42  ;;  %v216_v49 = vand.u32 2147483647, %v106_v41  ;;  %v221_v52 = vand.u32 2147483648, %v106_v41 }
  0x9f   :  { %v219_v47 = vcvt.s32.f32 %v218_v44  ;;  %v99_v48 = vsel %vm98_vm8, %v244_v31, %v95_v45  ;;  %vm217_vm10 = vcmp.lt.f32.partialorder %v216_v49, 8388608.0 }
  0xa0   :  { %v104_v50 = vsel %vm101_vm9, %v103_v46, %v99_v48 }
  0xa1   :  { %v220_v51 = vand.u32 2147483647, %v219_v47  ;;  %v105_v53 = vmul.f32 127.0, %v104_v50 }
  0xa3   :  { %v222_v54 = vor.u32 %v221_v52, %v220_v51  ;;  %v107_v55 = vmul.f32 %v105_v53, %v386_v2  ;;  %v128_v2 = vld [vmem:[#allocation9] sm:$0x3] }
  0xa4   :  { %v179_v7 = vperm.slane %v128_v2, 0  ;;  %v182_v10 = vperm.slane %v128_v2, 1 }
  0xa5   :  { %v223_v56 = vsel %vm217_vm10, %v222_v54, %v106_v41  ;;  %v226_v57 = vcvt.f32.s32 %v107_v55  ;;  %v224_v61 = vand.u32 2147483647, %v107_v55  ;;  %v229_v63 = vand.u32 2147483648, %v107_v55 }
  0xa6   :  { %v208_v58 = vclamps-f32 %v223_v56, 127.0 }
  0xa7   :  { %v227_v59 = vcvt.s32.f32 %v226_v57  ;;  %vm225_vm12 = vcmp.lt.f32.partialorder %v224_v61, 8388608.0 }
  0xa8   :  { %v114_v60 = vpack.c.bf16 %v208_v58, %v208_v58 }
  0xa9   :  { %v228_v62 = vand.u32 2147483647, %v227_v59 }
  0xaa   :  { %117 = vst.msk [vmem:[#allocation2] sm:$0xf] %vm116_vm11, %v114_v60 }
  0xab   :  { %v230_v0 = vor.u32 %v229_v63, %v228_v62 }
  0xad   :  { %v231_v1 = vsel %vm225_vm12, %v230_v0, %v107_v55 }
  0xae   :  { %v209_v3 = vclamps-f32 %v231_v1, 127.0 }
  0xb0   :  { %v115_v4 = vpack.c.bf16 %v209_v3, %v209_v3 }
  0xb2   :  { %118 = vst.msk [vmem:[#allocation2 + $0x4] sm:$0xf] %vm116_vm11, %v115_v4 }
  0xb9   :  { %v215_v5 = vld [vmem:[#allocation2] sm:$0xff] }
  0xba   :  { %214 = vmatmul.msk.bf16.vlgmr.msra.gmra.mxu0 %vm67_vm0, %v215_v5 }
 0x104   :  { %v170_v6 = vpop.permute.xlu1 %169 }
 0x10c   :  { %v175_v13 = vpop.permute.xlu1 %174 }
 0x137   :  { %v160_v8 = vpop.f32.mrf.mxu0 }
 0x138   :  { %v177_v9 = vmul.f32 %v170_v6, %v160_v8 }
 0x13a   :  { %v180_v11 = vmul.f32 %v179_v7, %v177_v9 }
 0x13c   :  { %v183_v12 = vadd.f32 %v182_v10, %v180_v11 }
 0x13e   :  { %185 = vst [vmem:[#allocation10] sm:$0xff] %v183_v12 }
 0x13f   :  { %v162_v14 = vpop.f32.mrf.mxu0 }
 0x140   :  { %v178_v15 = vmul.f32 %v175_v13, %v162_v14 }
 0x142   :  { %v181_v16 = vmul.f32 %v179_v7, %v178_v15 }
 0x144   :  { %v184_v17 = vadd.f32 %v182_v10, %v181_v16 }
 0x146   :  { %186 = vst [vmem:[#allocation10 + $0x8] sm:$0xff] %v184_v17 }
 0x147   :  { %199 = dma.vmem_to_hbm [thread:$0]  %s192_s2, 256, %s194_s30, [#allocation6], %s349_s22, %s349_s22, %s350_s23  }
 0x148   :  { %345 = dma.done.wait [#allocation6], 256  }
 0x149   :  { %346 = vsyncadd [#allocation6], 4294967040 }
 0x14a   :  { %204 = vsyncpa [#allocation5], 1 }
 0x14b   :  { %205 = vsyncpa [#allocation8], 1 }
 0x14c   :  { %206 = vsyncpa [#allocation6], 1 }

</bundles_post_ra>
